<compile_context>
chip_gen: v6e
topology: v6e:2x2x1
jax: 0.10.0
libtpu: 0.0.40
codegen_flags: <defaults>
</compile_context>

<pallas_src>
import jax
import jax.numpy as jnp
from jax.experimental import pallas as pl
from jax.experimental.pallas import tpu as pltpu

_LANE = 128


def _netlin_kernel(w_ref, x_ref, o_ref):
    # w_ref broadcasts against x_ref: (tile_m, 1) in the weight-column path,
    # (1, tile_k) in the lane-dense weight-row path.
    o_ref[...] = x_ref[...].astype(o_ref.dtype) * w_ref[...]


def _tpu_defaults():
    """(target_block_bytes, vmem_limit_bytes) tuned per TPU generation."""
    kind = ""
    try:
        kind = jax.devices()[0].device_kind.lower()
    except Exception:  # non-TPU backend / interpret mode
        pass
    if "v5" in kind:
        # v5e: ~0.82 TB/s HBM -> a 2 MiB step is ~5 us, per-step overhead <7%.
        return 2 * 1024 * 1024, 48 * 1024 * 1024
    if "v6" in kind:
        # v6e: ~1.4 TB/s HBM; 4 MiB blocks cut per-step overhead to ~5%.
        return 4 * 1024 * 1024, 48 * 1024 * 1024
    # v7x (3.2 TB/s HBM, only 64 MiB physical VMEM per TC) and unknown chips:
    # 6 MiB blocks -> (6+6)*2 = 24 MiB double-buffered footprint, <10% overhead.
    return 6 * 1024 * 1024, 44 * 1024 * 1024


def _pick_tiles(m, k, itemsize, target_block_bytes):
    """Pick a (tile_m, tile_k) block of roughly `target_block_bytes` bytes."""
    sub = max(8, 32 // itemsize)      # sublane align: 8 f32 / 16 bf16 / 32 int8
    k_pad = pl.cdiv(k, _LANE) * _LANE
    row_bytes = k_pad * itemsize

    if sub * row_bytes <= target_block_bytes:
        # Full-width rows: each block is a (mostly) contiguous HBM slab.
        tile_k = k                                    # full extent: always legal
        rows_budget = max(sub, target_block_bytes // max(row_bytes, 1))
        tile_m = m if m <= rows_budget else max(sub, (rows_budget // sub) * sub)
    else:
        # Very wide rows: split the lane axis into 128-aligned chunks; any
        # trailing partial block is masked by Pallas (legal: block shape, not
        # the array, must satisfy the (8,128) rule).
        tile_m = m if m < sub else sub
        tile_k = (target_block_bytes // (tile_m * itemsize) // _LANE) * _LANE
        tile_k = max(_LANE, tile_k)
        if tile_k >= k:
            tile_k = k

    # Guarantee >= 2 grid steps along a "parallel" axis so both TensorCores of
    # a v7x chip get work even when the tensor fits in a single block.
    if pl.cdiv(m, tile_m) == 1 and pl.cdiv(k, tile_k) == 1:
        if m >= 2 * sub:
            tile_m = max(sub, (m // 2 // sub) * sub)
        elif k >= 2 * _LANE:
            tile_k = max(_LANE, (pl.cdiv(k, 2) // _LANE) * _LANE)
    return tile_m, tile_k


def netlin_layer(x_nchw: jax.Array, weight: jax.Array,
                 *, target_block_bytes: int | None = None,
                 vmem_limit_bytes: int | None = None) -> jax.Array:
    """Applies out = weight * x with weight of shape (1, C, 1, 1), x NCHW."""
    n, c, h, w = x_nchw.shape
    assert weight.shape == (1, c, 1, 1)

    default_tb, default_vmem = _tpu_defaults()
    if target_block_bytes is None:
        target_block_bytes = default_tb
    if vmem_limit_bytes is None:
        vmem_limit_bytes = default_vmem

    # PyTorch-style type promotion (e.g. fp32 weight * bf16 input -> fp32 out).
    out_dtype = jnp.result_type(x_nchw.dtype, weight.dtype)
    itemsize = max(jnp.dtype(x_nchw.dtype).itemsize, jnp.dtype(out_dtype).itemsize)
    hw = h * w

    if hw % _LANE == 0:
        # Path A: (N*C, H*W) native-contiguity view; tiny per-row weight column.
        m, k = n * c, hw
        x2d = x_nchw.reshape(m, k)
        w_arr = jnp.broadcast_to(weight.reshape(1, c, 1), (n, c, 1))
        w_arr = w_arr.reshape(m, 1).astype(out_dtype)

        def w_spec(tm, tk):
            return pl.BlockSpec((tm, 1), lambda i, j: (i, 0))
    else:
        # Path B: small / non-128-multiple H*W.  Flatten to (N, C*H*W) with a
        # lane-dense pre-broadcast weight row so output stores stay unmasked.
        m, k = n, c * hw
        x2d = x_nchw.reshape(m, k)
        w_arr = jnp.broadcast_to(weight.reshape(c, 1), (c, hw))
        w_arr = w_arr.reshape(1, k).astype(out_dtype)

        def w_spec(tm, tk):
            return pl.BlockSpec((1, tk), lambda i, j: (0, j))

    tile_m, tile_k = _pick_tiles(m, k, itemsize, target_block_bytes)
    grid = (pl.cdiv(m, tile_m), pl.cdiv(k, tile_k))

    bytes_accessed = m * k * (jnp.dtype(x_nchw.dtype).itemsize
                              + jnp.dtype(out_dtype).itemsize)
    bytes_accessed += w_arr.size * jnp.dtype(out_dtype).itemsize

    out2d = pl.pallas_call(
        _netlin_kernel,
        out_shape=jax.ShapeDtypeStruct((m, k), out_dtype),
        grid_spec=pltpu.PrefetchScalarGridSpec(
            num_scalar_prefetch=0,
            grid=grid,
            in_specs=[
                w_spec(tile_m, tile_k),                                # weight
                pl.BlockSpec((tile_m, tile_k), lambda i, j: (i, j)),   # input
            ],
            out_specs=pl.BlockSpec((tile_m, tile_k), lambda i, j: (i, j)),
        ),
        compiler_params=pltpu.CompilerParams(
            # Both grid axes are independent -> shard across TensorCores.
            dimension_semantics=("parallel", "parallel"),
            vmem_limit_bytes=vmem_limit_bytes,
        ),
        cost_estimate=pl.CostEstimate(
            flops=m * k, transcendentals=0, bytes_accessed=bytes_accessed),
    )(w_arr, x2d)

    # Bitcast reshape back to NCHW (no transpose needed).
    return out2d.reshape(n, c, h, w)


if __name__ == "__main__":
    key = jax.random.PRNGKey(0)
    k_x, k_w, k_x2, k_w2 = jax.random.split(key, 4)

    # Case 1: lane-aligned spatial dims (H*W = 256) -> (N*C, H*W) path.
    n, c, h, w = 2, 4, 16, 16
    x = jax.random.normal(k_x, (n, c, h, w), dtype=jnp.float32)
    # nn.Parameter(torch.zeros(1, dim, 1, 1)) is zero-initialised; use nonzero
    # synthetic values so the kernel does meaningful work.
    weight = jax.random.normal(k_w, (1, c, 1, 1), dtype=jnp.float32)
    out = jax.block_until_ready(netlin_layer(x, weight))
    ref = weight * x
    assert out.shape == (n, c, h, w)
    assert jnp.allclose(out, ref, atol=1e-6, rtol=1e-6)

    # Case 2: small, non-128-multiple spatial dims (7x7, like deep LPIPS
    # stages) -> lane-dense (N, C*H*W) path.
    n2, c2, h2, w2 = 2, 8, 7, 7
    x2 = jax.random.normal(k_x2, (n2, c2, h2, w2), dtype=jnp.float32)
    weight2 = jax.random.normal(k_w2, (1, c2, 1, 1), dtype=jnp.float32)
    out2 = jax.block_until_ready(netlin_layer(x2, weight2))
    ref2 = weight2 * x2
    assert out2.shape == (n2, c2, h2, w2)
    assert jnp.allclose(out2, ref2, atol=1e-6, rtol=1e-6)

    print("KERNEL_OK")
</pallas_src>

<mosaic_0001>
module attributes {stable_mosaic.version = 11 : i64} {
  func.func @_netlin_kernel(%arg0: i32, %arg1: i32, %arg2: memref<8x1xf32, #tpu.memory_space<vmem>>, %arg3: memref<8x128xf32, #tpu.memory_space<vmem>>, %arg4: memref<8x128xf32, #tpu.memory_space<vmem>>) attributes {dimension_semantics = [#tpu.dimension_semantics<parallel>, #tpu.dimension_semantics<parallel>], iteration_bounds = array<i64: 1, 2>, scalar_prefetch = 0 : i64, scratch_operands = 0 : i64, tpu.core_type = #tpu.core_type<tc>, window_params = [{transform_indices = @transform_0, window_bounds = array<i64: 8, 1>}, {transform_indices = @transform_1, window_bounds = array<i64: 8, 128>}, {transform_indices = @transform_2, window_bounds = array<i64: 8, 128>}]} {
    %c0 = arith.constant 0 : index
    %c0_0 = arith.constant 0 : index
    %0 = vector.load %arg3[%c0, %c0_0] : memref<8x128xf32, #tpu.memory_space<vmem>>, vector<8x128xf32>
    %c0_1 = arith.constant 0 : index
    %c0_2 = arith.constant 0 : index
    %1 = vector.load %arg2[%c0_1, %c0_2] : memref<8x1xf32, #tpu.memory_space<vmem>>, vector<8x1xf32>
    %2 = vector.broadcast %1 : vector<8x1xf32> to vector<8x128xf32>
    %3 = arith.mulf %0, %2 : vector<8x128xf32>
    %c0_3 = arith.constant 0 : index
    %c0_4 = arith.constant 0 : index
    %4 = vector.load %arg4[%c0_3, %c0_4] : memref<8x128xf32, #tpu.memory_space<vmem>>, vector<8x128xf32>
    tpu.vector_store %arg4[%c0_3, %c0_4], %3 {strides = array<i32>} : memref<8x128xf32, #tpu.memory_space<vmem>>, vector<8x128xf32>,
    return
  }
  func.func @transform_0(%arg0: i32, %arg1: i32) -> (i32, i32) {
    %c0_i32 = arith.constant 0 : i32
    %c0_i32_0 = arith.constant 0 : i32
    return %arg0, %c0_i32 : i32, i32
  }
  func.func @transform_1(%arg0: i32, %arg1: i32) -> (i32, i32) {
    %c0_i32 = arith.constant 0 : i32
    return %arg0, %arg1 : i32, i32
  }
  func.func @transform_2(%arg0: i32, %arg1: i32) -> (i32, i32) {
    %c0_i32 = arith.constant 0 : i32
    return %arg0, %arg1 : i32, i32
  }
}

</mosaic_0001>

<bundles_post_ra>
// kernel: tpu_custom_call.1
= control target key start
LH: loop header
LB: loop body
LE: loop exit
PB: predicated region body
PF: predicated region fallthrough
CT: control target
= control target key end

     0   :  { %7 = vsyncpa [#allocation3], 0  ;;  %s659_s0 = inlined_call_operand.vmem [shape: f32[8,1], index: 0, kind: input, shape index: {}]   ;;  %s660_s1 = inlined_call_operand.hbm [shape: f32[8,256], index: 1, kind: input, shape index: {}]   ;;  %s661_s2 = inlined_call_operand.hbm [shape: f32[8,256], index: 2, kind: output, shape index: {}]  }
   0x1   :  { %9 = vsyncpa [#allocation3 + $0x1], 0 }
   0x2   :  { %10 = vsyncpa [#allocation4], 0 }
   0x3   :  { %12 = vsyncpa [#allocation4 + $0x1], 0  ;;  %s522_s9 = smov 0   ;;  %s524_s10 = smov 0  }
   0x4   :  { %s526_s11 = smov 0   ;;  %s528_s12 = smov 0  }
   0x5   :  { %s530_s13 = smov 0   ;;  %s532_s14 = smov 0  }
   0x6 LB: > { %s316_s15 = sadd.s32 4294967295, %s502_s14   ;;  %s317_s16 = sadd.s32 4294967294, %s502_s14   ;;  %s502_s14 = sphi %s532_s14, %s18_s14   ;;  %s498_s13 = sphi %s530_s13, %s673_s13   ;;  %s494_s12 = sphi %s528_s12, %s672_s12   ;;  %s490_s11 = sphi %s526_s11, %s671_s11   ;;  %s486_s10 = sphi %s524_s10, %s670_s10   ;;  %s482_s9 = sphi %s522_s9, %s669_s9  }
   0x7   : > { %s27_s17 = sadd.s32 1, %s498_s13  ;;  %s65_s18 = sadd.s32 1, %s490_s11 }
   0x8   : > { %p28_p0 = scmp.ge.s32.totalorder %s27_s17, 2  ;;  %p72_p1 = scmp.ne.s32.totalorder %s490_s11, %s486_s10 }
   0x9   : > { %p73_p2 = scmp.eq.s32.totalorder %s502_s14, 0  ;;  %p78_p3 = scmp.ne.s32.totalorder %s486_s10, %s482_s9 }
   0xa   : > { %s675_s17 = smov (%p28_p0, %s27_s17), 0  ;;  %p79_p5 = scmp.eq.s32.totalorder %s316_s15, 0 }
   0xb   : > { %p563_p4 = por %p73_p2, %p72_p1  ;;  %s61_s20 = ssub.s32 %s498_s13, %s675_s17 }
   0xc   : > { %p104_p6 = scmp.eq.s32.totalorder %s316_s15, 1  ;;  %p63_p7 = scmp.eq.s32.totalorder %s61_s20, 0 }
   0xd   : > { %p569_p8 = por %p79_p5, %p78_p3  ;;  %p110_p10 = scmp.eq.s32.totalorder %s317_s16, 1 }
   0xe   : > { %p573_p9 = por %p104_p6, %p72_p1  ;;  %p342_p13 = scmp.lt.s32.totalorder %s502_s14, 2 }
   0xf   : > { %s578_s23 = scalar_select %p63_p7, %s490_s11, %s65_s18  }
  0x10   : > { %p580_p11 = por %p110_p10, %p78_p3  ;;  %s137_s25 = sand.u32 1, %s490_s11  }
  0x11   : > { %s321_s26 = sshll.u32 %s137_s25, 3  ;;  %s322_s27 = sshll.u32 %s498_s13, 7 }
  0x12   : > { %s665_s24 = scalar_select %p580_p11, 1, 0 }
  0x13   : > { %s148_s30 = scalar_lea.hbm %s660_s1, %s322_s27  ;;  %s141_s3 = scalar_lea.vmem [#allocation2], %s321_s26 }
  0x14   : > { %s150_s4 = sshll.u32 %s141_s3, 4  ;;  %p593_p0 = pnand %p342_p13, %p563_p4  ;;  %s151_s4 = int_to_ptr.vmem [resolvable:$true] %s150_s4 }
  0x15   : > { %p323_p1 = scmp.ge.s32.totalorder %s502_s14, 1  ;;  %p155_p2 = scmp.lt.s32.totalorder %s502_s14, 3 }
  0x16   : > { %s138_s6 = scalar_lea.sflag [#allocation3], %s137_s25  ;;  %p396_p3 = pneg %p593_p0 }
  0x17   : > { %s407_s7 = scalar_lea.vmem %s151_s4, 128  ;;  %s504_s8 = smov [#allocation2]  }
  0x18   : > { %p408_p5 = scmp.ne.s32.totalorder %s151_s4, %s407_s7  ;;  %s412_s15 = sshll.u32 %s504_s8, 4  ;;  %s413_s15 = int_to_ptr.vmem [resolvable:$false] %s412_s15 }
  0x19   : > { %s414_s16 = scalar_lea.vmem %s413_s15, 256  ;;  %p415_p10 = scmp.lt.s32.totalorder %s151_s4, %s413_s15 }
  0x1a   : > { %p410_p6 = pnand %p408_p5, %p396_p3  ;;  %p416_p12 = scmp.lt.s32.totalorder %s414_s16, %s407_s7 }
  0x1c   : > { %p411_p7 = pneg %p410_p6  ;;  %p417_p4 = por %p416_p12, %p415_p10 }
  0x1e   : > { %p418_p13 = pnand %p417_p4, %p411_p7 }
  0x20   : > { %421 = shalt.err (!%p418_p13)
}
  0x21   : > { %337 = dma.hbm_to_vmem [thread:$0]  (!%p593_p0), %s148_s30, 128, %s151_s4, %s138_s6  }
  0x22   : > { %p156_p11 = pnand %p323_p1, %p155_p2 }
  0x23   : > { %s608_s18 = sand.u32 (!%p156_p11), 1, %s486_s10  }
  0x24   : > { %159 = sbr.rel (%p156_p11) target bundleno = 183 (0xb7), region = 28  ;;  %s324_s19 = sshll.u32 (!%p156_p11), %s608_s18, 3 }
  0x25   : > { %s162_s20 = scalar_lea.sflag (!%p156_p11), [#allocation3], %s608_s18  ;;  %s165_s25 = scalar_lea.vmem (!%p156_p11), [#allocation2], %s324_s19 }
  0x29   : > { %473 = dma.done.wait (%p569_p8), %s162_s20, 128  }
  0x2a   : > { %475 = vsyncadd (%p569_p8), %s162_s20, 4294967168  ;;  %v505_v0 = vmov 0   ;;  %v195_v1 = vld [vmem:[%s659_s0] sm:$0xff]  ;;  %s327_s28 = sshll.u32 %s494_s12, 7  ;;  %s189_s29 = scalar_lea.vmem [#allocation5], %s324_s19 }
  0x2b   : > { %393 = vset.pattern.permute.xlu0 %v505_v0  ;;  %v194_v2 = vld [vmem:[%s165_s25] sm:$0xff]  ;;  %s219_s30 = sshll.u32 %s189_s29, 4  ;;  %s217_s21 = scalar_lea.hbm %s661_s2, %s327_s28  ;;  %s220_s30 = int_to_ptr.vmem [resolvable:$true] %s219_s30 }
  0x2c   : > { %198 = vperm.xlu0 %393, %v195_v1   ;;  %s204_s5 = scalar_lea.sflag [#allocation4], %s608_s18  ;;  %s422_s6 = scalar_lea.vmem %s220_s30, 128 }
  0x2d   : > { %p423_p8 = scmp.ne.s32.totalorder %s220_s30, %s422_s6  ;;  %s506_s7 = smov [#allocation5]  }
  0x2e   : > { %s426_s8 = sshll.u32 %s506_s7, 4  ;;  %s427_s8 = int_to_ptr.vmem [resolvable:$false] %s426_s8 }
  0x2f   : > { %p424_p11 = pnand %p423_p8, %p573_p9  ;;  %s428_s12 = scalar_lea.vmem %s427_s8, 256 }
  0x30   : > { %p429_p0 = scmp.lt.s32.totalorder %s220_s30, %s427_s8  ;;  %p430_p1 = scmp.lt.s32.totalorder %s428_s12, %s422_s6 }
  0x31   : > { %p425_p12 = pneg %p424_p11 }
  0x32   : > { %p431_p2 = por %p430_p1, %p429_p0 }
  0x34   : > { %p432_p3 = pnand %p431_p2, %p425_p12 }
  0xa7   : > { %v199_v3 = vpop.permute.xlu0 %198 }
  0xa8   : > { %v201_v4 = vmul.f32 %v199_v3, %v194_v2 }
  0xaa   : > { %202 = vst [vmem:[%s189_s29] sm:$0xff] %v201_v4 }
  0xab   : > { %435 = shalt.err (!%p432_p3)
}
  0xac   : > { %s436_s15 = scalar_lea.hbm %s217_s21, 128  ;;  %s440_s19 = scalar_lea.hbm %s661_s2, 256 }
  0xad   : > { %p437_p5 = scmp.ne.s32.totalorder %s217_s21, %s436_s15  ;;  %p441_p10 = scmp.lt.s32.totalorder %s217_s21, %s661_s2 }
  0xae   : > { %p442_p4 = scmp.lt.s32.totalorder %s440_s19, %s436_s15 }
  0xaf   : > { %p438_p6 = pnand %p437_p5, %p573_p9 }
  0xb0   : > { %p443_p13 = por %p442_p4, %p441_p10 }
  0xb1   : > { %p439_p7 = pneg %p438_p6 }
  0xb3   : > { %p444_p8 = pnand %p443_p13, %p439_p7 }
  0xb5   : > { %447 = shalt.err (!%p444_p8)
}
  0xb6   : > { %332 = dma.vmem_to_hbm [thread:$0]  (%p573_p9), %s220_s30, 128, %s217_s21, %s204_s5  }
  0xb7 PF: > { %s231_s26 = sand.u32 1, %s482_s9   ;;  %p667_p11 = scmp.ne.s32.totalorder %s665_s24, 0 }
  0xb8   : > { %p668_p12 = scmp.ge.s32.totalorder %s502_s14, 2  ;;  %s232_s27 = scalar_lea.sflag [#allocation4], %s231_s26 }
  0xba   : > { %p339_p0 = pnand %p668_p12, %p667_p11 }
  0xbc   : > { %p340_p1 = pneg %p339_p0 }
  0xbe   : > { %477 = dma.done.wait (%p340_p1), %s232_s27, 128  }
  0xbf   : > { %479 = vsyncadd (%p340_p1), %s232_s27, 4294967168  ;;  %s18_s14 = sadd.s32 1, %s502_s14   ;;  %s669_s9 = smov %s486_s10 }
  0xc0   : > { %p15_p2 = scmp.ge.s32.totalorder %s18_s14, 4   ;;  %s670_s10 = smov %s490_s11 }
  0xc1   : > { %s671_s11 = smov %s578_s23  ;;  %s672_s12 = smov %s498_s13 }
  0xc2   : > { %s673_s13 = smov %s675_s17  ;;  %17 = sbr.rel (!%p15_p2) target bundleno = 6 (0x6), region = 76 }
  0xc7   :  { %237 = vsyncpa [#allocation3], 1 }
  0xc8   :  { %239 = vsyncpa [#allocation3 + $0x1], 1 }
  0xc9   :  { %240 = vsyncpa [#allocation4], 1 }
  0xca   :  { %242 = vsyncpa [#allocation4 + $0x1], 1 }

</bundles_post_ra>
